<compile_context>
chip_gen: v7x
topology: tpu7x:2x2x1
jax: 0.10.0
libtpu: 0.0.40
codegen_flags: <defaults>
</compile_context>

<pallas_src>
import math
import random

import jax
import jax.numpy as jnp
from jax.experimental import pallas as pl
from jax.experimental.pallas import tpu as pltpu

WIDE = 1024            # lane-dense last dim (8 sublanes * 128 lanes per f32 vreg)
MAX_BLOCK_ROWS = 512   # 512 * 1024 * 4 B = 2 MiB/block; double-buffered in+out = 8 MiB VMEM
TARGET_GRID_STEPS = 8  # keep several grid steps so v7x's 2 TCs + Buffered(2) both engage


def dynamic_net_kernel(params_ref, n_extra_ref, x_ref, y_ref):
    # params_ref : SMEM float32[5] -> a, b, c, d, e
    # n_extra_ref: SMEM int32[1]   -> number of extra e*x^exp terms (0, 1 or 2)
    a = params_ref[0]
    b = params_ref[1]
    c = params_ref[2]
    d = params_ref[3]
    e = params_ref[4]
    n_extra = n_extra_ref[0]

    x = x_ref[...]   # one wide lane-dense slab, loaded once for all branches

    # Degree-specialized Horner chains: only the taken branch emits VALU work.
    @pl.when(n_extra == 0)
    def _():
        y_ref[...] = a + x * (b + x * (c + x * d))

    @pl.when(n_extra == 1)
    def _():
        y_ref[...] = a + x * (b + x * (c + x * (d + x * e)))

    @pl.when(n_extra >= 2)
    def _():
        y_ref[...] = a + x * (b + x * (c + x * (d + x * (e + x * e))))


def _choose_block_rows(rows):
    if rows <= 8:
        # Tiny input: one block (block dim == full array dim, so the
        # multiple-of-8 sublane rule does not apply).
        return rows
    # Aim for ~TARGET_GRID_STEPS grid steps (multi-step "parallel" grid shards
    # across v7x's two TensorCores and lets the default double-buffering
    # overlap DMA with compute), capped at 2 MiB blocks.
    br = pl.cdiv(rows, TARGET_GRID_STEPS)
    br = ((br + 7) // 8) * 8           # sublane-dim blocks must be a multiple of 8
    return min(br, MAX_BLOCK_ROWS)


def dynamic_net_forward(x, params, n_extra):
    """x: float32[N] (any N); params: float32[5] = (a,b,c,d,e); n_extra: int32[1]."""
    n = x.shape[0]

    # Single (optional) pad up to the lane-dense width so the reshape to
    # (rows, 1024) is a free metadata op.  No second pad: a ragged number of
    # rows is handled by the cdiv grid + Pallas' masked partial last block.
    pad = (-n) % WIDE
    if pad:
        x = jnp.pad(x, (0, pad))
    rows = (n + pad) // WIDE
    x2d = x.reshape(rows, WIDE)

    block_rows = _choose_block_rows(rows)
    grid = (pl.cdiv(rows, block_rows),)

    out = pl.pallas_call(
        dynamic_net_kernel,
        out_shape=jax.ShapeDtypeStruct((rows, WIDE), x.dtype),
        grid=grid,
        in_specs=[
            pl.BlockSpec(memory_space=pltpu.MemorySpace.SMEM),   # params (whole array)
            pl.BlockSpec(memory_space=pltpu.MemorySpace.SMEM),   # n_extra (whole array)
            pl.BlockSpec((block_rows, WIDE), lambda i: (i, 0)),  # x slab
        ],
        out_specs=pl.BlockSpec((block_rows, WIDE), lambda i: (i, 0)),
        compiler_params=pltpu.CompilerParams(
            dimension_semantics=("parallel",)),
    )(params, n_extra, x2d)

    out_flat = out.reshape(-1)
    return out_flat[:n] if pad else out_flat


def dynamic_net_reference(x, params, n_extra):
    a, b, c, d, e = (params[i] for i in range(5))
    y = a + b * x + c * x**2 + d * x**3
    for exp in range(4, 4 + int(n_extra[0])):
        y = y + e * x**exp
    return y


if __name__ == "__main__":
    # Deterministic "parameters" (stand-ins for torch.randn(()) init).
    key = jax.random.PRNGKey(0)
    params = jax.random.normal(key, (5,), dtype=jnp.float32)  # a, b, c, d, e

    # Deterministic emulation of forward()'s `random.randint(4, 6)`.
    random.seed(0)
    n_extra_val = random.randint(4, 6) - 4          # 0, 1 or 2 extra terms
    n_extra = jnp.array([n_extra_val], dtype=jnp.int32)

    # Input like torch.linspace(-pi, pi, 2000) (not a multiple of 1024 ->
    # exercises the single-pad + slice path).
    N = 2000
    x = jnp.linspace(-math.pi, math.pi, N, dtype=jnp.float32)

    y = jax.block_until_ready(dynamic_net_forward(x, params, n_extra))
    y_ref = dynamic_net_reference(x, params, n_extra)
    assert y.shape == (N,) and y.dtype == jnp.float32
    assert jnp.allclose(y, y_ref, rtol=1e-5, atol=1e-5)

    # Exercise every degree-specialized branch plus the no-pad path with a
    # ragged row count (rows=9, block_rows=8 -> partial last block).
    for ne in (0, 1, 2):
        ne_arr = jnp.array([ne], dtype=jnp.int32)
        for n_test in (2000, 9 * WIDE):
            xt = jnp.linspace(-math.pi, math.pi, n_test, dtype=jnp.float32)
            yt = jax.block_until_ready(dynamic_net_forward(xt, params, ne_arr))
            yr = dynamic_net_reference(xt, params, ne_arr)
            assert yt.shape == (n_test,)
            assert jnp.allclose(yt, yr, rtol=1e-5, atol=1e-5)

    print("KERNEL_OK")
</pallas_src>

<mosaic_0001>
module attributes {stable_mosaic.version = 11 : i64} {
  func.func @dynamic_net_kernel(%arg0: i32, %arg1: memref<5xf32, #tpu.memory_space<smem>>, %arg2: memref<1xi32, #tpu.memory_space<smem>>, %arg3: memref<2x1024xf32, #tpu.memory_space<vmem>>, %arg4: memref<2x1024xf32, #tpu.memory_space<vmem>>) attributes {dimension_semantics = [#tpu.dimension_semantics<parallel>], iteration_bounds = array<i64: 1>, scalar_prefetch = 0 : i64, scratch_operands = 0 : i64, tpu.core_type = #tpu.core_type<tc>, window_params = [{transform_indices = @transform_0, window_bounds = array<i64: 5>}, {transform_indices = @transform_1, window_bounds = array<i64: 1>}, {transform_indices = @transform_2, window_bounds = array<i64: 2, 1024>}, {transform_indices = @transform_3, window_bounds = array<i64: 2, 1024>}]} {
    %c0 = arith.constant 0 : index
    %0 = memref.load %arg1[%c0] : memref<5xf32, #tpu.memory_space<smem>>
    %c1 = arith.constant 1 : index
    %1 = memref.load %arg1[%c1] : memref<5xf32, #tpu.memory_space<smem>>
    %c2 = arith.constant 2 : index
    %2 = memref.load %arg1[%c2] : memref<5xf32, #tpu.memory_space<smem>>
    %c3 = arith.constant 3 : index
    %3 = memref.load %arg1[%c3] : memref<5xf32, #tpu.memory_space<smem>>
    %c4 = arith.constant 4 : index
    %4 = memref.load %arg1[%c4] : memref<5xf32, #tpu.memory_space<smem>>
    %c0_0 = arith.constant 0 : index
    %5 = memref.load %arg2[%c0_0] : memref<1xi32, #tpu.memory_space<smem>>
    %c0_1 = arith.constant 0 : index
    %c0_2 = arith.constant 0 : index
    %6 = vector.load %arg3[%c0_1, %c0_2] : memref<2x1024xf32, #tpu.memory_space<vmem>>, vector<2x1024xf32>
    %c0_i32 = arith.constant 0 : i32
    %7 = arith.cmpi eq, %5, %c0_i32 : i32
    %8 = arith.extui %7 : i1 to i32
    %c0_i32_3 = arith.constant 0 : i32
    %9 = arith.cmpi ne, %8, %c0_i32_3 : i32
    scf.if %9 {
      %16 = vector.broadcast %3 : f32 to vector<2x1024xf32>
      %17 = arith.mulf %6, %16 : vector<2x1024xf32>
      %18 = vector.broadcast %2 : f32 to vector<2x1024xf32>
      %19 = arith.addf %18, %17 : vector<2x1024xf32>
      %20 = arith.mulf %6, %19 : vector<2x1024xf32>
      %21 = vector.broadcast %1 : f32 to vector<2x1024xf32>
      %22 = arith.addf %21, %20 : vector<2x1024xf32>
      %23 = arith.mulf %6, %22 : vector<2x1024xf32>
      %24 = vector.broadcast %0 : f32 to vector<2x1024xf32>
      %25 = arith.addf %24, %23 : vector<2x1024xf32>
      %c0_6 = arith.constant 0 : index
      %c0_7 = arith.constant 0 : index
      %26 = vector.load %arg4[%c0_6, %c0_7] : memref<2x1024xf32, #tpu.memory_space<vmem>>, vector<2x1024xf32>
      tpu.vector_store %arg4[%c0_6, %c0_7], %25 {strides = array<i32>} : memref<2x1024xf32, #tpu.memory_space<vmem>>, vector<2x1024xf32>,
    } else {
    }
    %c1_i32 = arith.constant 1 : i32
    %10 = arith.cmpi eq, %5, %c1_i32 : i32
    %11 = arith.extui %10 : i1 to i32
    %c0_i32_4 = arith.constant 0 : i32
    %12 = arith.cmpi ne, %11, %c0_i32_4 : i32
    scf.if %12 {
      %16 = vector.broadcast %4 : f32 to vector<2x1024xf32>
      %17 = arith.mulf %6, %16 : vector<2x1024xf32>
      %18 = vector.broadcast %3 : f32 to vector<2x1024xf32>
      %19 = arith.addf %18, %17 : vector<2x1024xf32>
      %20 = arith.mulf %6, %19 : vector<2x1024xf32>
      %21 = vector.broadcast %2 : f32 to vector<2x1024xf32>
      %22 = arith.addf %21, %20 : vector<2x1024xf32>
      %23 = arith.mulf %6, %22 : vector<2x1024xf32>
      %24 = vector.broadcast %1 : f32 to vector<2x1024xf32>
      %25 = arith.addf %24, %23 : vector<2x1024xf32>
      %26 = arith.mulf %6, %25 : vector<2x1024xf32>
      %27 = vector.broadcast %0 : f32 to vector<2x1024xf32>
      %28 = arith.addf %27, %26 : vector<2x1024xf32>
      %c0_6 = arith.constant 0 : index
      %c0_7 = arith.constant 0 : index
      %29 = vector.load %arg4[%c0_6, %c0_7] : memref<2x1024xf32, #tpu.memory_space<vmem>>, vector<2x1024xf32>
      tpu.vector_store %arg4[%c0_6, %c0_7], %28 {strides = array<i32>} : memref<2x1024xf32, #tpu.memory_space<vmem>>, vector<2x1024xf32>,
    } else {
    }
    %c2_i32 = arith.constant 2 : i32
    %13 = arith.cmpi sge, %5, %c2_i32 : i32
    %14 = arith.extui %13 : i1 to i32
    %c0_i32_5 = arith.constant 0 : i32
    %15 = arith.cmpi ne, %14, %c0_i32_5 : i32
    scf.if %15 {
      %16 = vector.broadcast %4 : f32 to vector<2x1024xf32>
      %17 = arith.mulf %6, %16 : vector<2x1024xf32>
      %18 = vector.broadcast %4 : f32 to vector<2x1024xf32>
      %19 = arith.addf %18, %17 : vector<2x1024xf32>
      %20 = arith.mulf %6, %19 : vector<2x1024xf32>
      %21 = vector.broadcast %3 : f32 to vector<2x1024xf32>
      %22 = arith.addf %21, %20 : vector<2x1024xf32>
      %23 = arith.mulf %6, %22 : vector<2x1024xf32>
      %24 = vector.broadcast %2 : f32 to vector<2x1024xf32>
      %25 = arith.addf %24, %23 : vector<2x1024xf32>
      %26 = arith.mulf %6, %25 : vector<2x1024xf32>
      %27 = vector.broadcast %1 : f32 to vector<2x1024xf32>
      %28 = arith.addf %27, %26 : vector<2x1024xf32>
      %29 = arith.mulf %6, %28 : vector<2x1024xf32>
      %30 = vector.broadcast %0 : f32 to vector<2x1024xf32>
      %31 = arith.addf %30, %29 : vector<2x1024xf32>
      %c0_6 = arith.constant 0 : index
      %c0_7 = arith.constant 0 : index
      %32 = vector.load %arg4[%c0_6, %c0_7] : memref<2x1024xf32, #tpu.memory_space<vmem>>, vector<2x1024xf32>
      tpu.vector_store %arg4[%c0_6, %c0_7], %31 {strides = array<i32>} : memref<2x1024xf32, #tpu.memory_space<vmem>>, vector<2x1024xf32>,
    } else {
    }
    return
  }
  func.func @transform_0(%arg0: i32) -> i32 {
    %c0_i32 = arith.constant 0 : i32
    %c0_i32_0 = arith.constant 0 : i32
    return %c0_i32 : i32
  }
  func.func @transform_1(%arg0: i32) -> i32 {
    %c0_i32 = arith.constant 0 : i32
    %c0_i32_0 = arith.constant 0 : i32
    return %c0_i32 : i32
  }
  func.func @transform_2(%arg0: i32) -> (i32, i32) {
    %c0_i32 = arith.constant 0 : i32
    %c0_i32_0 = arith.constant 0 : i32
    return %arg0, %c0_i32 : i32, i32
  }
  func.func @transform_3(%arg0: i32) -> (i32, i32) {
    %c0_i32 = arith.constant 0 : i32
    %c0_i32_0 = arith.constant 0 : i32
    return %arg0, %c0_i32 : i32, i32
  }
}

</mosaic_0001>

<bundles_post_ra>
// kernel: tpu_custom_call.1
= control target key start
LH: loop header
LB: loop body
LE: loop exit
PB: predicated region body
PF: predicated region fallthrough
CT: control target
= control target key end

     0   :  { %9 = vsyncpa [#allocation6], 0  ;;  %s328_s0 = inlined_call_operand.vmem [shape: f32[5], index: 0, kind: input, shape index: {}]   ;;  %s329_s1 = inlined_call_operand.<no memory space> [shape: s32[1], index: 1, kind: input, shape index: {}]   ;;  %s330_s2 = inlined_call_operand.hbm [shape: f32[2,1024], index: 2, kind: input, shape index: {}]   ;;  %s331_s3 = inlined_call_operand.hbm [shape: f32[2,1024], index: 3, kind: output, shape index: {}]  }
   0x1   :  { %10 = vsyncpa [#allocation4], 0 }
   0x2   :  { %11 = vsyncpa [#allocation5], 0  ;;  %s18_s14 = sshll.u32 %s328_s0, 4  ;;  %s19_s14 = int_to_ptr.vmem [resolvable:$true] %s18_s14 }
   0x3   :  { %s155_s15 = scalar_lea.vmem %s19_s14, 16  ;;  %p160_p1 = scmp.lt.s32.totalorder %s19_s14, %s19_s14 }
   0x4   :  { %p156_p0 = scmp.ne.s32.totalorder %s19_s14, %s155_s15  ;;  %p161_p2 = scmp.lt.s32.totalorder %s155_s15, %s155_s15 }
   0x6   :  { %p162_p3 = por %p161_p2, %p160_p1 }
   0x8   :  { %p163_p4 = pnand %p162_p3, %p156_p0 }
   0xa   :  { %166 = shalt.err (!%p163_p4)
}
   0xb   :  { %s217_s16 = smov [#allocation3]   ;;  %s218_s17 = smov [#allocation7]  }
   0xc   :  { %21 = dma.vmem_to_smem %s19_s14, 16, %s217_s16, [#allocation6]  }
   0xd   :  { %s30_s18 = sshll.u32 %s218_s17, 4  ;;  %s167_s21 = scalar_lea.hbm %s330_s2, 256  ;;  %s31_s18 = int_to_ptr.vmem [resolvable:$true] %s30_s18 }
   0xe   :  { %p168_p5 = scmp.ne.s32.totalorder %s330_s2, %s167_s21  ;;  %p171_p6 = scmp.lt.u32.totalorder %s167_s21, %s330_s2 }
  0x10   :  { %p173_p7 = pnand %p171_p6, %p168_p5 }
  0x12   :  { %176 = shalt.err (!%p173_p7)
}
  0x13   :  { %s177_s25 = scalar_lea.vmem %s31_s18, 256  ;;  %p182_p9 = scmp.lt.s32.totalorder %s31_s18, %s31_s18 }
  0x14   :  { %p178_p8 = scmp.ne.s32.totalorder %s31_s18, %s177_s25  ;;  %p183_p10 = scmp.lt.s32.totalorder %s177_s25, %s177_s25 }
  0x16   :  { %p184_p11 = por %p183_p10, %p182_p9 }
  0x18   :  { %p185_p12 = pnand %p184_p11, %p178_p8 }
  0x1a   :  { %188 = shalt.err (!%p185_p12)
}
  0x1b   :  { %33 = dma.hbm_to_vmem [thread:$0]  %s330_s2, 256, %s31_s18, [#allocation4]  }
  0x1c   :  { %211 = dma.done.wait [#allocation6], 16  }
  0x1d   :  { %212 = vsyncadd [#allocation6], 4294967280 }
  0x1e   :  { %213 = dma.done.wait [#allocation4], 256  }
  0x1f   :  { %214 = vsyncadd [#allocation4], 4294967040 }
  0x20   :  { %40 = sfence }
  0x21   :  { %s255_s28 = sld [smem:[#allocation3]]  ;;  %s257_s29 = sld [smem:[#allocation3 + $0x1]]  ;;  %v259_v0 = vld [vmem:[#allocation7] sm:$0xff]  ;;  %v261_v1 = vld [vmem:[#allocation7 + $0x8] sm:$0xff] }
  0x22   :  { %s263_s30 = sld [smem:[#allocation3 + $0x2]]  ;;  %s265_s4 = sld [smem:[#allocation3 + $0x3]] }
  0x23   :  { %s267_s5 = sld [smem:[#allocation3 + $0x4]]  ;;  %p149_p13 = scmp.ne.s32.totalorder %s329_s1, 0 }
  0x25   :  { %52 = sbr.rel (%p149_p13) target bundleno = 54 (0x36), region = 25 }
  0x27   :  { %v61_v8 = vstv (!%p149_p13), %s257_s29  ;;  %v66_v13 = vstv (!%p149_p13), %s255_s28 }
  0x28   :  { %v53_v2 = vstv (!%p149_p13), %s265_s4  ;;  %v56_v3 = vstv (!%p149_p13), %s263_s30 }
  0x29   :  { %v54_v4 = vmul.f32 (!%p149_p13), %v53_v2, %v259_v0  ;;  %v55_v5 = vmul.f32 (!%p149_p13), %v53_v2, %v261_v1 }
  0x2b   :  { %v57_v6 = vadd.f32 (!%p149_p13), %v56_v3, %v54_v4  ;;  %v58_v7 = vadd.f32 (!%p149_p13), %v56_v3, %v55_v5 }
  0x2d   :  { %v59_v9 = vmul.f32 %v57_v6, %v259_v0  ;;  %v60_v10 = vmul.f32 %v58_v7, %v261_v1 }
  0x2f   :  { %v62_v11 = vadd.f32 %v61_v8, %v59_v9  ;;  %v63_v12 = vadd.f32 %v61_v8, %v60_v10 }
  0x31   :  { %v64_v14 = vmul.f32 %v62_v11, %v259_v0  ;;  %v65_v15 = vmul.f32 %v63_v12, %v261_v1 }
  0x33   :  { %v67_v16 = vadd.f32 %v66_v13, %v64_v14  ;;  %v68_v17 = vadd.f32 %v66_v13, %v65_v15 }
  0x35   :  { %69 = vst [vmem:[#allocation8] sm:$0xff] %v67_v16  ;;  %70 = vst [vmem:[#allocation8 + $0x8] sm:$0xff] %v68_v17 }
  0x36 PF:  { %p150_p0 = scmp.ne.s32.totalorder %s329_s1, 1 }
  0x37   :  { %v75_v18 = vstv (!%p150_p0), %s267_s5  ;;  %v78_v19 = vstv (!%p150_p0), %s265_s4  ;;  %v83_v24 = vstv (!%p150_p0), %s263_s30  ;;  %v88_v29 = vstv (!%p150_p0), %s257_s29 }
  0x38   :  { %74 = sbr.rel (%p150_p0) target bundleno = 73 (0x49), region = 29  ;;  %v76_v20 = vmul.f32 (!%p150_p0), %v75_v18, %v259_v0  ;;  %v77_v21 = vmul.f32 (!%p150_p0), %v75_v18, %v261_v1  ;;  %v93_v34 = vstv (!%p150_p0), %s255_s28 }
  0x3a   :  { %v79_v22 = vadd.f32 (!%p150_p0), %v78_v19, %v76_v20  ;;  %v80_v23 = vadd.f32 (!%p150_p0), %v78_v19, %v77_v21 }
  0x3c   :  { %v81_v25 = vmul.f32 (!%p150_p0), %v79_v22, %v259_v0  ;;  %v82_v26 = vmul.f32 (!%p150_p0), %v80_v23, %v261_v1 }
  0x3e   :  { %v84_v27 = vadd.f32 (!%p150_p0), %v83_v24, %v81_v25  ;;  %v85_v28 = vadd.f32 (!%p150_p0), %v83_v24, %v82_v26 }
  0x40   :  { %v86_v30 = vmul.f32 %v84_v27, %v259_v0  ;;  %v87_v31 = vmul.f32 %v85_v28, %v261_v1 }
  0x42   :  { %v89_v32 = vadd.f32 %v88_v29, %v86_v30  ;;  %v90_v33 = vadd.f32 %v88_v29, %v87_v31 }
  0x44   :  { %v91_v35 = vmul.f32 %v89_v32, %v259_v0  ;;  %v92_v36 = vmul.f32 %v90_v33, %v261_v1 }
  0x46   :  { %v94_v37 = vadd.f32 %v93_v34, %v91_v35  ;;  %v95_v38 = vadd.f32 %v93_v34, %v92_v36 }
  0x48   :  { %96 = vst [vmem:[#allocation8] sm:$0xff] %v94_v37  ;;  %97 = vst [vmem:[#allocation8 + $0x8] sm:$0xff] %v95_v38 }
  0x49 PF:  { %p151_p1 = scmp.lt.s32.totalorder %s329_s1, 2 }
  0x4a   :  { %v102_v39 = vstv (!%p151_p1), %s267_s5  ;;  %v109_v44 = vstv (!%p151_p1), %s265_s4  ;;  %v114_v49 = vstv (!%p151_p1), %s263_s30  ;;  %v119_v54 = vstv (!%p151_p1), %s257_s29 }
  0x4b   :  { %101 = sbr.rel (%p151_p1) target bundleno = 96 (0x60), region = 33  ;;  %v103_v40 = vmul.f32 (!%p151_p1), %v102_v39, %v259_v0  ;;  %v104_v41 = vmul.f32 (!%p151_p1), %v102_v39, %v261_v1  ;;  %v124_v59 = vstv (!%p151_p1), %s255_s28 }
  0x4d   :  { %v105_v42 = vadd.f32 (!%p151_p1), %v103_v40, %v102_v39  ;;  %v106_v43 = vadd.f32 (!%p151_p1), %v104_v41, %v102_v39 }
  0x4f   :  { %v107_v45 = vmul.f32 (!%p151_p1), %v105_v42, %v259_v0  ;;  %v108_v46 = vmul.f32 (!%p151_p1), %v106_v43, %v261_v1 }
  0x51   :  { %v110_v47 = vadd.f32 (!%p151_p1), %v109_v44, %v107_v45  ;;  %v111_v48 = vadd.f32 (!%p151_p1), %v109_v44, %v108_v46 }
  0x53   :  { %v112_v50 = vmul.f32 %v110_v47, %v259_v0  ;;  %v113_v51 = vmul.f32 %v111_v48, %v261_v1 }
  0x55   :  { %v115_v52 = vadd.f32 %v114_v49, %v112_v50  ;;  %v116_v53 = vadd.f32 %v114_v49, %v113_v51 }
  0x57   :  { %v117_v55 = vmul.f32 %v115_v52, %v259_v0  ;;  %v118_v56 = vmul.f32 %v116_v53, %v261_v1 }
  0x59   :  { %v120_v57 = vadd.f32 %v119_v54, %v117_v55  ;;  %v121_v58 = vadd.f32 %v119_v54, %v118_v56 }
  0x5b   :  { %v122_v60 = vmul.f32 %v120_v57, %v259_v0  ;;  %v123_v61 = vmul.f32 %v121_v58, %v261_v1 }
  0x5d   :  { %v125_v62 = vadd.f32 %v124_v59, %v122_v60  ;;  %v126_v63 = vadd.f32 %v124_v59, %v123_v61 }
  0x5f   :  { %127 = vst [vmem:[#allocation8] sm:$0xff] %v125_v62  ;;  %128 = vst [vmem:[#allocation8 + $0x8] sm:$0xff] %v126_v63 }
  0x60 PF:  { %s219_s1 = smov [#allocation8]  }
  0x61   :  { %s135_s11 = sshll.u32 %s219_s1, 4  ;;  %s136_s11 = int_to_ptr.vmem [resolvable:$true] %s135_s11 }
  0x62   :  { %s189_s12 = scalar_lea.vmem %s136_s11, 256  ;;  %p194_p3 = scmp.lt.s32.totalorder %s136_s11, %s136_s11 }
  0x63   :  { %p190_p2 = scmp.ne.s32.totalorder %s136_s11, %s189_s12  ;;  %p195_p4 = scmp.lt.s32.totalorder %s189_s12, %s189_s12 }
  0x65   :  { %p196_p5 = por %p195_p4, %p194_p3 }
  0x67   :  { %p197_p6 = pnand %p196_p5, %p190_p2 }
  0x69   :  { %200 = shalt.err (!%p197_p6)
}
  0x6a   :  { %s201_s15 = scalar_lea.hbm %s331_s3, 256 }
  0x6b   :  { %p202_p7 = scmp.ne.s32.totalorder %s331_s3, %s201_s15  ;;  %p205_p8 = scmp.lt.u32.totalorder %s201_s15, %s331_s3 }
  0x6d   :  { %p207_p9 = pnand %p205_p8, %p202_p7 }
  0x6f   :  { %210 = shalt.err (!%p207_p9)
}
  0x70   :  { %138 = dma.vmem_to_hbm [thread:$0]  %s136_s11, 256, %s331_s3, [#allocation5]  }
  0x71   :  { %215 = dma.done.wait [#allocation5], 256  }
  0x72   :  { %216 = vsyncadd [#allocation5], 4294967040 }
  0x73   :  { %142 = vsyncpa [#allocation4], 1 }
  0x74   :  { %143 = vsyncpa [#allocation5], 1 }
  0x75   :  { %144 = vsyncpa [#allocation6], 1 }

</bundles_post_ra>
